<compile_context>
chip_gen: v7x
topology: tpu7x:2x2x1
jax: 0.10.0
libtpu: 0.0.40
codegen_flags: <defaults>
</compile_context>

<pallas_src>
import math

import numpy as np
import jax
import jax.numpy as jnp
from jax.experimental import pallas as pl
from jax.experimental.pallas import tpu as pltpu


# ----------------------------------------------------------------------------
# sincos positional embedding helpers (numpy, verbatim port, version == 2.0)
# ----------------------------------------------------------------------------
def get_1d_sincos_pos_embed_from_grid(embed_dim, pos):
    assert embed_dim % 2 == 0
    omega = np.arange(embed_dim // 2, dtype=np.float32)
    omega /= embed_dim / 2.0
    omega = 1.0 / 10000 ** omega
    pos = pos.reshape(-1)
    out = np.einsum("m,d->md", pos, omega)
    return np.concatenate([np.sin(out), np.cos(out)], axis=1)


def get_2d_sincos_pos_embed_from_grid(embed_dim, grid):
    assert embed_dim % 2 == 0
    emb_h = get_1d_sincos_pos_embed_from_grid(embed_dim // 2, grid[0])
    emb_w = get_1d_sincos_pos_embed_from_grid(embed_dim // 2, grid[1])
    return np.concatenate([emb_h, emb_w], axis=1)


def get_2d_sincos_pos_embed(embed_dim, grid_size):
    if isinstance(grid_size, int):
        gh, gw = grid_size, grid_size
    else:
        gh, gw = grid_size[0], grid_size[1]
    grid_h = np.arange(gh, dtype=np.float32)
    grid_w = np.arange(gw, dtype=np.float32)
    grid = np.meshgrid(grid_w, grid_h)
    grid = np.stack(grid, axis=0).reshape([2, 1, gh, gw])
    return get_2d_sincos_pos_embed_from_grid(embed_dim, grid)


# ----------------------------------------------------------------------------
# shared math helpers
# ----------------------------------------------------------------------------
def _layernorm(x, w, b, eps=1e-6):
    # PyTorch nn.LayerNorm semantics: biased variance over last dim, eps in sqrt.
    mu = jnp.mean(x, axis=-1, keepdims=True)
    xc = x - mu
    var = jnp.mean(xc * xc, axis=-1, keepdims=True)
    return xc * jax.lax.rsqrt(var + eps) * w + b


# ----------------------------------------------------------------------------
# Pallas kernel
# ----------------------------------------------------------------------------
def make_resampler_kernel(num_heads, head_dim):
    H, dh = num_heads, head_dim
    E = H * dh
    BF = jnp.bfloat16
    F32 = jnp.float32

    def kernel(x_ref, qh_ref, kvw_ref, lnkv_w_ref, lnkv_b_ref,
               wkv_ref, kvbias_ref, woh_ref, bo_ref,
               lnpost_w_ref, lnpost_b_ref, proj_ref, out_ref):
        # x_ref block is (S, KV) bf16 (leading batch dim squeezed via BlockSpec).
        # kv_proj (Linear, no bias): bf16 operands, f32 accumulation; ln_kv in f32.
        kv = jnp.dot(x_ref[...], kvw_ref[...], preferred_element_type=F32)   # (S, E)
        kv = _layernorm(kv, lnkv_w_ref[...], lnkv_b_ref[...])

        # Fused K/V in-projection: one (S,E)x(E,2E) MXU op.  kvbias already
        # carries pos_k @ Wk + bk (keys) and bv (values), precomputed outside.
        kvp = jnp.dot(kv.astype(BF), wkv_ref[...],
                      preferred_element_type=F32) + kvbias_ref[...]          # (S, 2E)
        kvp = kvp.astype(BF)

        # Head-major views (H, S, dh).  At production sizes dh is a multiple of
        # 128, so these extracts are lane-tile aligned (no relayout).
        kh = jnp.stack([kvp[:, h * dh:(h + 1) * dh] for h in range(H)], axis=0)
        vh = jnp.stack([kvp[:, E + h * dh:E + (h + 1) * dh] for h in range(H)], axis=0)

        # Head-batched attention.  qh already includes ln_q, query pos embed,
        # Wq, bq and the 1/sqrt(dh) scale (hoisted into the wrapper).
        s = jnp.einsum("hqd,hsd->hqs", qh_ref[...], kh,
                       preferred_element_type=F32)                           # (H, Q, S)
        s = s - jnp.max(s, axis=-1, keepdims=True)
        p = jnp.exp(s)
        p = p * pl.reciprocal(jnp.sum(p, axis=-1, keepdims=True), approx=True)
        o = jnp.einsum("hqs,hsd->hqd", p.astype(BF), vh,
                       preferred_element_type=F32)                           # (H, Q, dh)

        # MHA out_proj with head-split weight: attn = sum_h o_h @ Wo_h + bo.
        attn = jnp.einsum("hqd,hde->hqe", o.astype(BF), woh_ref[...],
                          preferred_element_type=F32).sum(axis=0)            # (Q, E)
        attn = attn + bo_ref[...]

        # ln_post, then final projection x @ proj.
        y = _layernorm(attn, lnpost_w_ref[...], lnpost_b_ref[...])
        out_ref[...] = jnp.dot(y.astype(BF), proj_ref[...],
                               preferred_element_type=F32)                   # (Q, E)

    return kernel


def resampler_forward(x, params, pos_k):
    """x: (B, S, KV) float32. Returns (B, Q, E) float32."""
    B, S, KV = x.shape
    Q, E = params["query"].shape
    H = params["num_heads"]
    dh = E // H
    scale = 1.0 / math.sqrt(dh)
    BF = jnp.bfloat16

    # ---- batch-invariant precompute (hoisted out of the kernel) ------------
    # Query path: ln_q(query) + pos_q, in-projection, softmax scale folded in.
    q_in = _layernorm(params["query"], params["ln_q_w"], params["ln_q_b"]) + params["pos_q"]
    qp = (q_in @ params["wq"] + params["bq"]) * scale                        # (Q, E) f32
    qh = jnp.transpose(qp.reshape(Q, H, dh), (1, 0, 2)).astype(BF)           # (H, Q, dh)

    # Fused K/V in-projection weight and its static additive term:
    #   kp = kv @ Wk + (pos_k @ Wk + bk),   vp = kv @ Wv + bv
    wkv = jnp.concatenate([params["wk"], params["wv"]], axis=1).astype(BF)   # (E, 2E)
    k_bias = pos_k @ params["wk"] + params["bk"]                             # (S, E)
    v_bias = jnp.broadcast_to(params["bv"], (S, E))
    kv_bias = jnp.concatenate([k_bias, v_bias], axis=1)                      # (S, 2E) f32

    woh = params["wo"].reshape(H, dh, E).astype(BF)                          # (H, dh, E)
    kvw = params["kv_w"].astype(BF)
    proj = params["proj"].astype(BF)
    xb = x.astype(BF)

    def const_spec(shape):
        # TODO(synk): for production shapes mark these pipeline_mode=pl.Buffered(1)
        # (single-buffered resident weights) instead of the default double buffer.
        zeros = (0,) * len(shape)
        return pl.BlockSpec(shape, lambda b, _z=zeros: _z)

    in_specs = [
        pl.BlockSpec((None, S, KV), lambda b: (b, 0, 0)),    # x (per-batch tile)
        const_spec((H, Q, dh)),                              # hoisted, scaled q heads
        const_spec((KV, E)),                                 # kv_proj weight
        const_spec((1, E)), const_spec((1, E)),              # ln_kv w, b
        const_spec((E, 2 * E)),                              # fused [Wk | Wv]
        const_spec((S, 2 * E)),                              # fused K/V additive term
        const_spec((H, dh, E)),                              # Wo, head-split
        const_spec((1, E)),                                  # bo
        const_spec((1, E)), const_spec((1, E)),              # ln_post w, b
        const_spec((E, E)),                                  # proj
    ]
    out_spec = pl.BlockSpec((None, Q, E), lambda b: (b, 0, 0))

    kernel = make_resampler_kernel(H, dh)
    return pl.pallas_call(
        kernel,
        out_shape=jax.ShapeDtypeStruct((B, Q, E), jnp.float32),
        grid_spec=pltpu.PrefetchScalarGridSpec(
            num_scalar_prefetch=0,
            grid=(B,),
            in_specs=in_specs,
            out_specs=out_spec,
        ),
        compiler_params=pltpu.CompilerParams(
            dimension_semantics=("parallel",)),
    )(xb, qh, kvw,
      params["ln_kv_w"], params["ln_kv_b"],
      wkv, kv_bias, woh, params["bo"],
      params["ln_post_w"], params["ln_post_b"],
      proj)


# ----------------------------------------------------------------------------
# pure-JAX fp32 reference (same math as the module) for a correctness check
# ----------------------------------------------------------------------------
def resampler_reference(x, params, pos_k):
    B, S, KV = x.shape
    Q, E = params["query"].shape
    H = params["num_heads"]
    dh = E // H
    scale = 1.0 / math.sqrt(dh)

    kv = jnp.einsum("bsk,ke->bse", x, params["kv_w"])
    kv = _layernorm(kv, params["ln_kv_w"], params["ln_kv_b"])
    k_in = kv + pos_k[None]
    v_in = kv
    q_in = _layernorm(params["query"], params["ln_q_w"], params["ln_q_b"]) + params["pos_q"]

    qp = q_in @ params["wq"] + params["bq"]                             # (Q, E)
    kp = jnp.einsum("bse,ef->bsf", k_in, params["wk"]) + params["bk"]
    vp = jnp.einsum("bse,ef->bsf", v_in, params["wv"]) + params["bv"]

    qh = qp.reshape(Q, H, dh)
    kh = kp.reshape(B, S, H, dh)
    vh = vp.reshape(B, S, H, dh)
    s = jnp.einsum("qhd,bshd->bhqs", qh, kh) * scale
    p = jax.nn.softmax(s, axis=-1)
    o = jnp.einsum("bhqs,bshd->bqhd", p, vh).reshape(B, Q, E)
    o = o @ params["wo"] + params["bo"]
    y = _layernorm(o, params["ln_post_w"], params["ln_post_b"])
    return y @ params["proj"]


# ----------------------------------------------------------------------------
# main
# ----------------------------------------------------------------------------
if __name__ == "__main__":
    # Small, module-consistent shapes.
    B = 2              # batch (2 grid steps -> both TensorCores on v7x)
    grid_size = 4      # -> num_queries Q = 16
    E = 32             # embed_dim
    H = 4              # num_heads (head_dim = 8)
    KV = 16            # kv_dim != embed_dim -> kv_proj is a real Linear
    tgt_sizes = (4, 8) # adaptive=True key grid -> S = 32
    Q = grid_size ** 2
    S = tgt_sizes[0] * tgt_sizes[1]

    key = jax.random.PRNGKey(0)
    keys = jax.random.split(key, 10)

    # Deterministic synthetic parameters (shapes/roles follow __init__; LayerNorm
    # weights=1 / biases=0 and attention biases=0 as in the module initializers).
    params = {
        "num_heads": H,
        "query": (0.02 * jax.random.normal(keys[0], (Q, E))).astype(jnp.float32),
        "kv_w": (0.02 * jax.random.normal(keys[1], (KV, E))).astype(jnp.float32),   # (in, out)
        "ln_kv_w": jnp.ones((1, E), jnp.float32),
        "ln_kv_b": jnp.zeros((1, E), jnp.float32),
        "ln_q_w": jnp.ones((1, E), jnp.float32),
        "ln_q_b": jnp.zeros((1, E), jnp.float32),
        "wq": (0.02 * jax.random.normal(keys[2], (E, E))).astype(jnp.float32),
        "wk": (0.02 * jax.random.normal(keys[3], (E, E))).astype(jnp.float32),
        "wv": (0.02 * jax.random.normal(keys[4], (E, E))).astype(jnp.float32),
        "bq": jnp.zeros((1, E), jnp.float32),
        "bk": jnp.zeros((1, E), jnp.float32),
        "bv": jnp.zeros((1, E), jnp.float32),
        "wo": (0.02 * jax.random.normal(keys[5], (E, E))).astype(jnp.float32),
        "bo": jnp.zeros((1, E), jnp.float32),
        "ln_post_w": jnp.ones((1, E), jnp.float32),
        "ln_post_b": jnp.zeros((1, E), jnp.float32),
        "proj": (E ** -0.5 * jax.random.normal(keys[6], (E, E))).astype(jnp.float32),
        # fixed 2D sincos pos embed for the queries (self.pos_embed, grid_size**2 x E)
        "pos_q": jnp.asarray(get_2d_sincos_pos_embed(E, grid_size), jnp.float32),
    }

    # adaptive=True key positional embedding for tgt_sizes
    # TODO(synk): non-adaptive path uses F.interpolate(mode='bicubic') (get_abs_pos);
    #             bicubic resampling is not reimplemented here (adaptive path used).
    # TODO(synk): attn_mask / key_padding_mask not supported (None in this test).
    pos_k = jnp.asarray(get_2d_sincos_pos_embed(E, tgt_sizes), jnp.float32)   # (S, E)

    x = jax.random.normal(keys[7], (B, S, KV), dtype=jnp.float32)

    out = jax.block_until_ready(resampler_forward(x, params, pos_k))
    ref = jax.block_until_ready(resampler_reference(x, params, pos_k))

    assert out.shape == (B, Q, E)
    # Kernel uses bf16 matmul operands (f32 accumulation) + approx reciprocal,
    # so compare against the fp32 reference with a correspondingly looser tol.
    np.testing.assert_allclose(np.asarray(out), np.asarray(ref), rtol=2e-2, atol=2e-2)
    assert np.all(np.isfinite(np.asarray(out)))

    print("KERNEL_OK")
</pallas_src>

<mosaic_0001>
module attributes {stable_mosaic.version = 11 : i64} {
  func.func @kernel(%arg0: i32, %arg1: memref<1x32x16xbf16, #tpu.memory_space<vmem>>, %arg2: memref<4x16x8xbf16, #tpu.memory_space<vmem>>, %arg3: memref<16x32xbf16, #tpu.memory_space<vmem>>, %arg4: memref<1x32xf32, #tpu.memory_space<vmem>>, %arg5: memref<1x32xf32, #tpu.memory_space<vmem>>, %arg6: memref<32x64xbf16, #tpu.memory_space<vmem>>, %arg7: memref<32x64xf32, #tpu.memory_space<vmem>>, %arg8: memref<4x8x32xbf16, #tpu.memory_space<vmem>>, %arg9: memref<1x32xf32, #tpu.memory_space<vmem>>, %arg10: memref<1x32xf32, #tpu.memory_space<vmem>>, %arg11: memref<1x32xf32, #tpu.memory_space<vmem>>, %arg12: memref<32x32xbf16, #tpu.memory_space<vmem>>, %arg13: memref<1x16x32xf32, #tpu.memory_space<vmem>>) attributes {dimension_semantics = [#tpu.dimension_semantics<parallel>], iteration_bounds = array<i64: 2>, scalar_prefetch = 0 : i64, scratch_operands = 0 : i64, tpu.core_type = #tpu.core_type<tc>, window_params = [{transform_indices = @transform_0, window_bounds = array<i64: 1, 32, 16>}, {pipeline_mode = #tpu.pipeline_mode<synchronous>, transform_indices = @transform_1, window_bounds = array<i64: 4, 16, 8>}, {pipeline_mode = #tpu.pipeline_mode<synchronous>, transform_indices = @transform_2, window_bounds = array<i64: 16, 32>}, {pipeline_mode = #tpu.pipeline_mode<synchronous>, transform_indices = @transform_3, window_bounds = array<i64: 1, 32>}, {pipeline_mode = #tpu.pipeline_mode<synchronous>, transform_indices = @transform_4, window_bounds = array<i64: 1, 32>}, {pipeline_mode = #tpu.pipeline_mode<synchronous>, transform_indices = @transform_5, window_bounds = array<i64: 32, 64>}, {pipeline_mode = #tpu.pipeline_mode<synchronous>, transform_indices = @transform_6, window_bounds = array<i64: 32, 64>}, {pipeline_mode = #tpu.pipeline_mode<synchronous>, transform_indices = @transform_7, window_bounds = array<i64: 4, 8, 32>}, {pipeline_mode = #tpu.pipeline_mode<synchronous>, transform_indices = @transform_8, window_bounds = array<i64: 1, 32>}, {pipeline_mode = #tpu.pipeline_mode<synchronous>, transform_indices = @transform_9, window_bounds = array<i64: 1, 32>}, {pipeline_mode = #tpu.pipeline_mode<synchronous>, transform_indices = @transform_10, window_bounds = array<i64: 1, 32>}, {pipeline_mode = #tpu.pipeline_mode<synchronous>, transform_indices = @transform_11, window_bounds = array<i64: 32, 32>}, {transform_indices = @transform_12, window_bounds = array<i64: 1, 16, 32>}]} {
    %c0 = arith.constant 0 : index
    %c0_0 = arith.constant 0 : index
    %c0_1 = arith.constant 0 : index
    %0 = vector.load %arg1[%c0, %c0_0, %c0_1] : memref<1x32x16xbf16, #tpu.memory_space<vmem>>, vector<1x32x16xbf16>
    %1 = vector.shape_cast %0 : vector<1x32x16xbf16> to vector<32x16xbf16>
    %c0_2 = arith.constant 0 : index
    %c0_3 = arith.constant 0 : index
    %2 = vector.load %arg3[%c0_2, %c0_3] : memref<16x32xbf16, #tpu.memory_space<vmem>>, vector<16x32xbf16>
    %cst = arith.constant dense<0.000000e+00> : vector<32x32xf32>
    %3 = tpu.matmul %1, %2, %cst {dimension_numbers = #tpu.dot_dimension_numbers<[1], [0], [0], [1], [0, 0, 1, 1], [], []>} : vector<32x16xbf16>, vector<16x32xbf16>, vector<32x32xf32> -> vector<32x32xf32>
    %c0_4 = arith.constant 0 : index
    %c0_5 = arith.constant 0 : index
    %4 = vector.load %arg4[%c0_4, %c0_5] : memref<1x32xf32, #tpu.memory_space<vmem>>, vector<1x32xf32>
    %c0_6 = arith.constant 0 : index
    %c0_7 = arith.constant 0 : index
    %5 = vector.load %arg5[%c0_6, %c0_7] : memref<1x32xf32, #tpu.memory_space<vmem>>, vector<1x32xf32>
    %cst_8 = arith.constant dense<0.000000e+00> : vector<32xf32>
    %6 = vector.multi_reduction <add>, %3, %cst_8 [1] : vector<32x32xf32> to vector<32xf32>
    %7 = vector.shape_cast %6 : vector<32xf32> to vector<32x1xf32>
    %cst_9 = arith.constant 3.200000e+01 : f32
    %8 = vector.broadcast %cst_9 : f32 to vector<32x1xf32>
    %9 = arith.divf %7, %8 : vector<32x1xf32>
    %10 = vector.broadcast %9 : vector<32x1xf32> to vector<32x32xf32>
    %11 = arith.subf %3, %10 : vector<32x32xf32>
    %12 = arith.mulf %11, %11 : vector<32x32xf32>
    %cst_10 = arith.constant dense<0.000000e+00> : vector<32xf32>
    %13 = vector.multi_reduction <add>, %12, %cst_10 [1] : vector<32x32xf32> to vector<32xf32>
    %14 = vector.shape_cast %13 : vector<32xf32> to vector<32x1xf32>
    %cst_11 = arith.constant 3.200000e+01 : f32
    %15 = vector.broadcast %cst_11 : f32 to vector<32x1xf32>
    %16 = arith.divf %14, %15 : vector<32x1xf32>
    %cst_12 = arith.constant 9.99999997E-7 : f32
    %17 = vector.broadcast %cst_12 : f32 to vector<32x1xf32>
    %18 = arith.addf %16, %17 : vector<32x1xf32>
    %19 = math.rsqrt %18 : vector<32x1xf32>
    %20 = vector.broadcast %19 : vector<32x1xf32> to vector<32x32xf32>
    %21 = arith.mulf %11, %20 : vector<32x32xf32>
    %22 = vector.broadcast %4 : vector<1x32xf32> to vector<32x32xf32>
    %23 = arith.mulf %21, %22 : vector<32x32xf32>
    %24 = vector.broadcast %5 : vector<1x32xf32> to vector<32x32xf32>
    %25 = arith.addf %23, %24 : vector<32x32xf32>
    %26 = arith.truncf %25 : vector<32x32xf32> to vector<32x32xbf16>
    %c0_13 = arith.constant 0 : index
    %c0_14 = arith.constant 0 : index
    %27 = vector.load %arg6[%c0_13, %c0_14] : memref<32x64xbf16, #tpu.memory_space<vmem>>, vector<32x64xbf16>
    %cst_15 = arith.constant dense<0.000000e+00> : vector<32x64xf32>
    %28 = tpu.matmul %26, %27, %cst_15 {dimension_numbers = #tpu.dot_dimension_numbers<[1], [0], [0], [1], [0, 0, 1, 1], [], []>} : vector<32x32xbf16>, vector<32x64xbf16>, vector<32x64xf32> -> vector<32x64xf32>
    %c0_16 = arith.constant 0 : index
    %c0_17 = arith.constant 0 : index
    %29 = vector.load %arg7[%c0_16, %c0_17] : memref<32x64xf32, #tpu.memory_space<vmem>>, vector<32x64xf32>
    %30 = arith.addf %28, %29 : vector<32x64xf32>
    %31 = arith.truncf %30 : vector<32x64xf32> to vector<32x64xbf16>
    %32 = vector.extract_strided_slice %31 {offsets = [0, 0], sizes = [32, 8], strides = [1, 1]} : vector<32x64xbf16> to vector<32x8xbf16>
    %33 = vector.extract_strided_slice %31 {offsets = [0, 8], sizes = [32, 8], strides = [1, 1]} : vector<32x64xbf16> to vector<32x8xbf16>
    %34 = vector.extract_strided_slice %31 {offsets = [0, 16], sizes = [32, 8], strides = [1, 1]} : vector<32x64xbf16> to vector<32x8xbf16>
    %35 = vector.extract_strided_slice %31 {offsets = [0, 24], sizes = [32, 8], strides = [1, 1]} : vector<32x64xbf16> to vector<32x8xbf16>
    %36 = vector.shape_cast %32 : vector<32x8xbf16> to vector<1x32x8xbf16>
    %37 = vector.shape_cast %33 : vector<32x8xbf16> to vector<1x32x8xbf16>
    %38 = vector.shape_cast %34 : vector<32x8xbf16> to vector<1x32x8xbf16>
    %39 = vector.shape_cast %35 : vector<32x8xbf16> to vector<1x32x8xbf16>
    %40 = tpu.concatenate %36, %37, %38, %39 in 0 : vector<1x32x8xbf16>, vector<1x32x8xbf16>, vector<1x32x8xbf16>, vector<1x32x8xbf16> -> vector<4x32x8xbf16>
    %41 = vector.extract_strided_slice %31 {offsets = [0, 32], sizes = [32, 8], strides = [1, 1]} : vector<32x64xbf16> to vector<32x8xbf16>
    %42 = vector.extract_strided_slice %31 {offsets = [0, 40], sizes = [32, 8], strides = [1, 1]} : vector<32x64xbf16> to vector<32x8xbf16>
    %43 = vector.extract_strided_slice %31 {offsets = [0, 48], sizes = [32, 8], strides = [1, 1]} : vector<32x64xbf16> to vector<32x8xbf16>
    %44 = vector.extract_strided_slice %31 {offsets = [0, 56], sizes = [32, 8], strides = [1, 1]} : vector<32x64xbf16> to vector<32x8xbf16>
    %45 = vector.shape_cast %41 : vector<32x8xbf16> to vector<1x32x8xbf16>
    %46 = vector.shape_cast %42 : vector<32x8xbf16> to vector<1x32x8xbf16>
    %47 = vector.shape_cast %43 : vector<32x8xbf16> to vector<1x32x8xbf16>
    %48 = vector.shape_cast %44 : vector<32x8xbf16> to vector<1x32x8xbf16>
    %49 = tpu.concatenate %45, %46, %47, %48 in 0 : vector<1x32x8xbf16>, vector<1x32x8xbf16>, vector<1x32x8xbf16>, vector<1x32x8xbf16> -> vector<4x32x8xbf16>
    %c0_18 = arith.constant 0 : index
    %c0_19 = arith.constant 0 : index
    %c0_20 = arith.constant 0 : index
    %50 = vector.load %arg2[%c0_18, %c0_19, %c0_20] : memref<4x16x8xbf16, #tpu.memory_space<vmem>>, vector<4x16x8xbf16>
    "tpu.trace_start"() <{level = 10 : i32, message = "hqd,hsd->hqs"}> : () -> ()
    %cst_21 = arith.constant dense<0.000000e+00> : vector<4x16x32xf32>
    %51 = tpu.matmul %50, %40, %cst_21 {dimension_numbers = #tpu.dot_dimension_numbers<[2], [2], [1], [1], [0, 0, 0, 1, 1, 1], [0], [0]>} : vector<4x16x8xbf16>, vector<4x32x8xbf16>, vector<4x16x32xf32> -> vector<4x16x32xf32>
    "tpu.trace_stop"() : () -> ()
    %cst_22 = arith.constant dense<0xFF800000> : vector<4x16xf32>
    %52 = vector.multi_reduction <maximumf>, %51, %cst_22 [2] : vector<4x16x32xf32> to vector<4x16xf32>
    %53 = vector.shape_cast %52 : vector<4x16xf32> to vector<4x16x1xf32>
    %54 = vector.broadcast %53 : vector<4x16x1xf32> to vector<4x16x32xf32>
    %55 = arith.subf %51, %54 : vector<4x16x32xf32>
    %56 = math.exp %55 : vector<4x16x32xf32>
    %cst_23 = arith.constant dense<0.000000e+00> : vector<4x16xf32>
    %57 = vector.multi_reduction <add>, %56, %cst_23 [2] : vector<4x16x32xf32> to vector<4x16xf32>
    %58 = vector.shape_cast %57 : vector<4x16xf32> to vector<4x16x1xf32>
    %59 = tpu.reciprocal %58 {approx = true} : vector<4x16x1xf32> -> vector<4x16x1xf32>
    %60 = vector.broadcast %59 : vector<4x16x1xf32> to vector<4x16x32xf32>
    %61 = arith.mulf %56, %60 : vector<4x16x32xf32>
    %62 = arith.truncf %61 : vector<4x16x32xf32> to vector<4x16x32xbf16>
    "tpu.trace_start"() <{level = 10 : i32, message = "hqs,hsd->hqd"}> : () -> ()
    %cst_24 = arith.constant dense<0.000000e+00> : vector<4x16x8xf32>
    %63 = tpu.matmul %62, %49, %cst_24 {dimension_numbers = #tpu.dot_dimension_numbers<[2], [1], [1], [2], [0, 0, 0, 1, 1, 2], [0], [0]>} : vector<4x16x32xbf16>, vector<4x32x8xbf16>, vector<4x16x8xf32> -> vector<4x16x8xf32>
    "tpu.trace_stop"() : () -> ()
    %64 = arith.truncf %63 : vector<4x16x8xf32> to vector<4x16x8xbf16>
    %c0_25 = arith.constant 0 : index
    %c0_26 = arith.constant 0 : index
    %c0_27 = arith.constant 0 : index
    %65 = vector.load %arg8[%c0_25, %c0_26, %c0_27] : memref<4x8x32xbf16, #tpu.memory_space<vmem>>, vector<4x8x32xbf16>
    "tpu.trace_start"() <{level = 10 : i32, message = "hqd,hde->hqe"}> : () -> ()
    %cst_28 = arith.constant dense<0.000000e+00> : vector<4x16x32xf32>
    %66 = tpu.matmul %64, %65, %cst_28 {dimension_numbers = #tpu.dot_dimension_numbers<[2], [1], [1], [2], [0, 0, 0, 1, 1, 2], [0], [0]>} : vector<4x16x8xbf16>, vector<4x8x32xbf16>, vector<4x16x32xf32> -> vector<4x16x32xf32>
    "tpu.trace_stop"() : () -> ()
    %cst_29 = arith.constant dense<0.000000e+00> : vector<16x32xf32>
    %67 = vector.multi_reduction <add>, %66, %cst_29 [0] : vector<4x16x32xf32> to vector<16x32xf32>
    %c0_30 = arith.constant 0 : index
    %c0_31 = arith.constant 0 : index
    %68 = vector.load %arg9[%c0_30, %c0_31] : memref<1x32xf32, #tpu.memory_space<vmem>>, vector<1x32xf32>
    %69 = vector.broadcast %68 : vector<1x32xf32> to vector<16x32xf32>
    %70 = arith.addf %67, %69 : vector<16x32xf32>
    %c0_32 = arith.constant 0 : index
    %c0_33 = arith.constant 0 : index
    %71 = vector.load %arg10[%c0_32, %c0_33] : memref<1x32xf32, #tpu.memory_space<vmem>>, vector<1x32xf32>
    %c0_34 = arith.constant 0 : index
    %c0_35 = arith.constant 0 : index
    %72 = vector.load %arg11[%c0_34, %c0_35] : memref<1x32xf32, #tpu.memory_space<vmem>>, vector<1x32xf32>
    %cst_36 = arith.constant dense<0.000000e+00> : vector<16xf32>
    %73 = vector.multi_reduction <add>, %70, %cst_36 [1] : vector<16x32xf32> to vector<16xf32>
    %74 = vector.shape_cast %73 : vector<16xf32> to vector<16x1xf32>
    %cst_37 = arith.constant 3.200000e+01 : f32
    %75 = vector.broadcast %cst_37 : f32 to vector<16x1xf32>
    %76 = arith.divf %74, %75 : vector<16x1xf32>
    %77 = vector.broadcast %76 : vector<16x1xf32> to vector<16x32xf32>
    %78 = arith.subf %70, %77 : vector<16x32xf32>
    %79 = arith.mulf %78, %78 : vector<16x32xf32>
    %cst_38 = arith.constant dense<0.000000e+00> : vector<16xf32>
    %80 = vector.multi_reduction <add>, %79, %cst_38 [1] : vector<16x32xf32> to vector<16xf32>
    %81 = vector.shape_cast %80 : vector<16xf32> to vector<16x1xf32>
    %cst_39 = arith.constant 3.200000e+01 : f32
    %82 = vector.broadcast %cst_39 : f32 to vector<16x1xf32>
    %83 = arith.divf %81, %82 : vector<16x1xf32>
    %cst_40 = arith.constant 9.99999997E-7 : f32
    %84 = vector.broadcast %cst_40 : f32 to vector<16x1xf32>
    %85 = arith.addf %83, %84 : vector<16x1xf32>
    %86 = math.rsqrt %85 : vector<16x1xf32>
    %87 = vector.broadcast %86 : vector<16x1xf32> to vector<16x32xf32>
    %88 = arith.mulf %78, %87 : vector<16x32xf32>
    %89 = vector.broadcast %71 : vector<1x32xf32> to vector<16x32xf32>
    %90 = arith.mulf %88, %89 : vector<16x32xf32>
    %91 = vector.broadcast %72 : vector<1x32xf32> to vector<16x32xf32>
    %92 = arith.addf %90, %91 : vector<16x32xf32>
    %93 = arith.truncf %92 : vector<16x32xf32> to vector<16x32xbf16>
    %c0_41 = arith.constant 0 : index
    %c0_42 = arith.constant 0 : index
    %94 = vector.load %arg12[%c0_41, %c0_42] : memref<32x32xbf16, #tpu.memory_space<vmem>>, vector<32x32xbf16>
    %cst_43 = arith.constant dense<0.000000e+00> : vector<16x32xf32>
    %95 = tpu.matmul %93, %94, %cst_43 {dimension_numbers = #tpu.dot_dimension_numbers<[1], [0], [0], [1], [0, 0, 1, 1], [], []>} : vector<16x32xbf16>, vector<32x32xbf16>, vector<16x32xf32> -> vector<16x32xf32>
    %c0_44 = arith.constant 0 : index
    %c0_45 = arith.constant 0 : index
    %c0_46 = arith.constant 0 : index
    %96 = vector.load %arg13[%c0_44, %c0_45, %c0_46] : memref<1x16x32xf32, #tpu.memory_space<vmem>>, vector<1x16x32xf32>
    %97 = vector.shape_cast %96 : vector<1x16x32xf32> to vector<16x32xf32>
    %98 = vector.shape_cast %95 : vector<16x32xf32> to vector<1x16x32xf32>
    tpu.vector_store %arg13[%c0_44, %c0_45, %c0_46], %98 {strides = array<i32>} : memref<1x16x32xf32, #tpu.memory_space<vmem>>, vector<1x16x32xf32>,
    return
  }
  func.func @transform_0(%arg0: i32) -> (i32, i32, i32) {
    %c0_i32 = arith.constant 0 : i32
    %c0_i32_0 = arith.constant 0 : i32
    %c0_i32_1 = arith.constant 0 : i32
    return %arg0, %c0_i32, %c0_i32_0 : i32, i32, i32
  }
  func.func @transform_1(%arg0: i32) -> (i32, i32, i32) {
    %c0_i32 = arith.constant 0 : i32
    %c0_i32_0 = arith.constant 0 : i32
    %c0_i32_1 = arith.constant 0 : i32
    %c0_i32_2 = arith.constant 0 : i32
    return %c0_i32, %c0_i32_0, %c0_i32_1 : i32, i32, i32
  }
  func.func @transform_2(%arg0: i32) -> (i32, i32) {
    %c0_i32 = arith.constant 0 : i32
    %c0_i32_0 = arith.constant 0 : i32
    %c0_i32_1 = arith.constant 0 : i32
    return %c0_i32, %c0_i32_0 : i32, i32
  }
  func.func @transform_3(%arg0: i32) -> (i32, i32) {
    %c0_i32 = arith.constant 0 : i32
    %c0_i32_0 = arith.constant 0 : i32
    %c0_i32_1 = arith.constant 0 : i32
    return %c0_i32, %c0_i32_0 : i32, i32
  }
  func.func @transform_4(%arg0: i32) -> (i32, i32) {
    %c0_i32 = arith.constant 0 : i32
    %c0_i32_0 = arith.constant 0 : i32
    %c0_i32_1 = arith.constant 0 : i32
    return %c0_i32, %c0_i32_0 : i32, i32
  }
  func.func @transform_5(%arg0: i32) -> (i32, i32) {
    %c0_i32 = arith.constant 0 : i32
    %c0_i32_0 = arith.constant 0 : i32
    %c0_i32_1 = arith.constant 0 : i32
    return %c0_i32, %c0_i32_0 : i32, i32
  }
  func.func @transform_6(%arg0: i32) -> (i32, i32) {
    %c0_i32 = arith.constant 0 : i32
    %c0_i32_0 = arith.constant 0 : i32
    %c0_i32_1 = arith.constant 0 : i32
    return %c0_i32, %c0_i32_0 : i32, i32
  }
  func.func @transform_7(%arg0: i32) -> (i32, i32, i32) {
    %c0_i32 = arith.constant 0 : i32
    %c0_i32_0 = arith.constant 0 : i32
    %c0_i32_1 = arith.constant 0 : i32
    %c0_i32_2 = arith.constant 0 : i32
    return %c0_i32, %c0_i32_0, %c0_i32_1 : i32, i32, i32
  }
  func.func @transform_8(%arg0: i32) -> (i32, i32) {
    %c0_i32 = arith.constant 0 : i32
    %c0_i32_0 = arith.constant 0 : i32
    %c0_i32_1 = arith.constant 0 : i32
    return %c0_i32, %c0_i32_0 : i32, i32
  }
  func.func @transform_9(%arg0: i32) -> (i32, i32) {
    %c0_i32 = arith.constant 0 : i32
    %c0_i32_0 = arith.constant 0 : i32
    %c0_i32_1 = arith.constant 0 : i32
    return %c0_i32, %c0_i32_0 : i32, i32
  }
  func.func @transform_10(%arg0: i32) -> (i32, i32) {
    %c0_i32 = arith.constant 0 : i32
    %c0_i32_0 = arith.constant 0 : i32
    %c0_i32_1 = arith.constant 0 : i32
    return %c0_i32, %c0_i32_0 : i32, i32
  }
  func.func @transform_11(%arg0: i32) -> (i32, i32) {
    %c0_i32 = arith.constant 0 : i32
    %c0_i32_0 = arith.constant 0 : i32
    %c0_i32_1 = arith.constant 0 : i32
    return %c0_i32, %c0_i32_0 : i32, i32
  }
  func.func @transform_12(%arg0: i32) -> (i32, i32, i32) {
    %c0_i32 = arith.constant 0 : i32
    %c0_i32_0 = arith.constant 0 : i32
    %c0_i32_1 = arith.constant 0 : i32
    return %arg0, %c0_i32, %c0_i32_0 : i32, i32, i32
  }
}

</mosaic_0001>

<bundles_post_ra>
// kernel: tpu_custom_call.1
= control target key start
LH: loop header
LB: loop body
LE: loop exit
PB: predicated region body
PF: predicated region fallthrough
CT: control target
= control target key end

     0   :  { %17 = vsyncpa [#allocation3], 0  ;;  %s2480_s0 = inlined_call_operand.vmem [shape: bf16[2,32,16], index: 0, kind: input, shape index: {}]   ;;  %s2481_s1 = inlined_call_operand.vmem [shape: bf16[4,16,8], index: 1, kind: input, shape index: {}]   ;;  %s2482_s2 = inlined_call_operand.hbm [shape: bf16[16,32], index: 2, kind: input, shape index: {}]   ;;  %s2483_s3 = inlined_call_operand.vmem [shape: f32[1,32], index: 3, kind: input, shape index: {}]   ;;  %s2484_s4 = inlined_call_operand.vmem [shape: f32[1,32], index: 4, kind: input, shape index: {}]   ;;  %s2485_s5 = inlined_call_operand.vmem [shape: bf16[32,64], index: 5, kind: input, shape index: {}]   ;;  %s2486_s6 = inlined_call_operand.vmem [shape: f32[32,64], index: 6, kind: input, shape index: {}]   ;;  %s2487_s7 = inlined_call_operand.vmem [shape: bf16[4,8,32], index: 7, kind: input, shape index: {}]   ;;  %s2488_s8 = inlined_call_operand.vmem [shape: f32[1,32], index: 8, kind: input, shape index: {}]   ;;  %s2489_s9 = inlined_call_operand.vmem [shape: f32[1,32], index: 9, kind: input, shape index: {}]   ;;  %s2490_s10 = inlined_call_operand.vmem [shape: f32[1,32], index: 10, kind: input, shape index: {}]   ;;  %s2491_s11 = inlined_call_operand.vmem [shape: bf16[32,32], index: 11, kind: input, shape index: {}]   ;;  %s2492_s12 = inlined_call_operand.hbm [shape: f32[2,16,32], index: 12, kind: output, shape index: {}]  }
   0x1   :  { %18 = vsyncpa [#allocation4], 0 }
   0x2   :  { %20 = vsyncpa [#allocation4 + $0x1], 0  ;;  %s2100_s21 = smov 0   ;;  %s2102_s22 = smov 0  }
   0x3   :  { %s2104_s23 = smov 0   ;;  %s2106_s24 = smov 0  }
   0x4 LB: > { %2497 = sst [smem:[#allocation8_spill]] %s2017_s23  ;;  %s2121_s25 = sadd.s32 4294967295, %s2021_s24   ;;  %s2021_s24 = sphi %s2106_s24, %s2512_s24   ;;  %s2017_s23 = sphi %s2104_s23, %s2509_s23   ;;  %s2013_s22 = sphi %s2102_s22, %s2511_s22   ;;  %s2009_s21 = sphi %s2100_s21, %s2510_s21  }
   0x5   : > { %s1611_s26 = sadd.s32 4294967294, %s2021_s24   ;;  %s2125_s27 = sadd.s32 1, %s2021_s24  }
   0x6   : > { %s290_s28 = sadd.s32 1, %s2017_s23  ;;  %s287_s29 = ssub.s32 %s2021_s24, %s2125_s27 }
   0x7   : > { %p300_p0 = scmp.ne.s32.totalorder %s2017_s23, %s2013_s22  ;;  %p288_p1 = scmp.eq.s32.totalorder %s287_s29, 0 }
   0x8   : > { %p301_p2 = scmp.eq.s32.totalorder %s2121_s25, 1  ;;  %p306_p3 = scmp.ne.s32.totalorder %s2013_s22, %s2009_s21 }
   0x9   : > { %p307_p4 = scmp.eq.s32.totalorder %s1611_s26, 1  ;;  %p1612_p7 = scmp.ge.s32.totalorder %s2021_s24, 1 }
   0xa   : > { %s2136_s30 = scalar_select %p288_p1, %s2017_s23, %s290_s28  }
   0xb   : > { %p2138_p5 = por %p301_p2, %p300_p0  ;;  %p2142_p6 = por %p307_p4, %p306_p3 }
   0xc   : > { %2498 = sst [smem:[#allocation9_spill]] %s2136_s30  ;;  %p314_p8 = scmp.lt.s32.totalorder %s2021_s24, 3 }
   0xd   : > { %s2499_s13 = scalar_select %p2138_p5, 1, 0 }
   0xe   : > { %s2500_s14 = scalar_select %p2142_p6, 1, 0 }
   0xf   : > { %p2494_p9 = scmp.eq.s32.totalorder %s2121_s25, 0  ;;  %p2149_p10 = pnand %p1612_p7, %p314_p8 }
  0x10   : > { %s2023_s16 = smov [#allocation2]   ;;  %s1927_s26 = scalar_lea.hbm %s2482_s2, 128 }
  0x11   : > { %s2501_s15 = scalar_select %p2149_p10, 1, 0 }
  0x12   : > { %s329_s17 = sshll.u32 %s2023_s16, 4  ;;  %p1818_p11 = pneg %p2149_p10  ;;  %s330_s17 = int_to_ptr.vmem [resolvable:$true] %s329_s17 }
  0x13   : > { %p1928_p13 = scmp.ne.s32.totalorder %s2482_s2, %s1927_s26  ;;  %p1934_p3 = scmp.lt.u32.totalorder %s1927_s26, %s2482_s2 }
  0x14   : > { %p2157_p12 = pnand %p2494_p9, %p1818_p11 }
  0x16   : > { %p1929_p0 = pneg %p2157_p12 }
  0x18   : > { %p1930_p1 = pnand %p1929_p0, %p1928_p13 }
  0x1a   : > { %p1931_p2 = pneg %p1930_p1 }
  0x1c   : > { %p1936_p4 = pnand %p1934_p3, %p1931_p2 }
  0x1e   : > { %1939 = shalt.err (!%p1936_p4)
}
  0x1f   : > { %s1940_s23 = scalar_lea.vmem %s330_s17, 128  ;;  %p1948_p9 = scmp.lt.s32.totalorder %s330_s17, %s330_s17 }
  0x20   : > { %p1941_p7 = scmp.ne.s32.totalorder %s330_s17, %s1940_s23  ;;  %p1949_p6 = scmp.lt.s32.totalorder %s1940_s23, %s1940_s23 }
  0x22   : > { %p1943_p8 = pnand %p1941_p7, %p1929_p0  ;;  %p1950_p5 = por %p1949_p6, %p1948_p9 }
  0x24   : > { %p1944_p11 = pneg %p1943_p8 }
  0x26   : > { %p1951_p10 = pnand %p1950_p5, %p1944_p11 }
  0x28   : > { %1954 = shalt.err (!%p1951_p10)
}
  0x29   : > { %s2024_s19 = smov 64   ;;  %s2025_s20 = smov 4  }
  0x2a   : > { %1821 = dma.hbm_to_vmem [thread:$0]  (!%p2157_p12), %s2482_s2, 128, %s330_s17, [#allocation3], %s2024_s19, %s2024_s19, %s2025_s20  }
  0x2b   : > { %p2503_p13 = scmp.ne.s32.totalorder %s2501_s15, 0 }
  0x2c   : > { %p2504_p1 = scmp.eq.s32.totalorder (!%p2503_p13), %s2121_s25, 0 }
  0x2d   : > { %380 = sbr.rel (%p2503_p13) target bundleno = 2474 (0x9aa), region = 68 }
  0x34   : > { %2000 = dma.done.wait (%p2504_p1), [#allocation3], 128   ;;  %p2505_p0 = pmov %p2504_p1 }
  0x35   : > { %p422_p5 = scmp.lt.s32.totalorder %s2121_s25, 1  ;;  %v1872_v0 = vld [vmem:[#allocation2] sm:$0xff]   ;;  %vm450_vm0 = vcmask 130048   ;;  %vm508_vm1 = vcmask 261120   ;;  %v1876_v32 = vld [vmem:[%s2485_s5 + $0x8] sm:$0xff]   ;;  %vm2027_vm2 = vmmov 0  }
  0x36   : > { %2002 = vsyncadd (%p2505_p0), [#allocation3], 4294967168  ;;  %1702 = vmatprep.subr.bf16.mxu0 %v1872_v0  ;;  %v1875_v31 = vld [vmem:[%s2485_s5] sm:$0xff]   ;;  %vm688_vm3 = vcmask 64512   ;;  %s2028_s29 = smov 120   ;;  %vm1207_vm4 = vcmask 1043456  }
  0x37   : > { %s423_s23 = scalar_select %p422_p5, %s2121_s25, 1  ;;  %1703 = vmatpush3.bf16.msra.mxu0 %v1872_v0  ;;  %1708 = vmatprep.subr.bf16.mxu1 %v1875_v31  ;;  %v1625_v47 = vld [vmem:[%s2483_s3] ss:$0 sm:$0xff] }
  0x38   : > { %1709 = vmatpush3.bf16.msra.mxu1 %v1875_v31  ;;  %v1626_v53 = vld [vmem:[%s2484_s4] ss:$0 sm:$0xff]  ;;  %s419_s19 = sand.u32 1, %s2013_s22   ;;  %p2506_p9 = scmp.ne.s32.totalorder %s2499_s13, 0 }
  0x39   : > { %s1658_s30 = sshll.u32 %s423_s23, 4  ;;  %1710 = vmatprep.subr.bf16.mxu1 %v1876_v32  ;;  %s2029_s23 = smov 112  }
  0x3a   : > { %s426_s16 = scalar_lea.vmem %s2480_s0, %s1658_s30  ;;  %s2030_s30 = smov 104  }
  0x3b   : > { %v1873_v1 = vld [vmem:[%s426_s16] sm:$0xff]   ;;  %v1874_v2 = vld [vmem:[%s426_s16 + $0x8] sm:$0xff]   ;;  %s1617_s20 = sshll.u32 %s419_s19, 4  ;;  %s2439_s16 = scalar_lea.sflag [#allocation4], %s419_s19 }
  0x3c   : > { %1704 = vmatprep.mubr.msk.bf16.mxu0 %vm450_vm0, %v1873_v1  ;;  %1711 = vmatpush3.bf16.msra.mxu1 %v1876_v32  ;;  %v2026_v1 = vmov 0.0   ;;  %s421_s28 = scalar_lea.vmem [#allocation5], %s1617_s20  ;;  %s2032_s15 = smov [#allocation5]  }
  0x3d   : > { %1705 = vmatmul.mubr.msk.bf16.vlgmr.msra.gmra.mrb[0].mxu0 %vm450_vm0, %v1874_v2  ;;  %1716 = vmatprep.subr.bf16.mxu0 %v2026_v1  ;;  %v590_v2 = vld [vmem:[%s2486_s6 + $0x10] sm:$0xff]  ;;  %s1959_s17 = sshll.u32 %s2032_s15, 4  ;;  %s1960_s17 = int_to_ptr.vmem [resolvable:$false] %s1959_s17 }
  0x3e   : > { %1724 = vmatprep.subr.bf16.mxu1 %v2026_v1  ;;  %1720 = vmatprep.mubr.msk.bf16.mxu0 %vm2027_vm2, %v2026_v1  ;;  %s1961_s20 = scalar_lea.vmem %s1960_s17, 512 }
 0x110   : > { %v1706_v3 = vpop.f32.mrb[0].mxu0 }
 0x111   : > { %v491_v4 = vpop.f32.mrb[1].mxu0  ;;  %v515_v5 = vsel %vm508_vm1, %v1706_v3, 0.0 }
 0x112   : > { %516 = vadd.xlane.f32.xlu1 %v515_v5  ;;  %v1707_v6 = vpop.f32.mrb[2].mxu0  ;;  %v509_v7 = vsel %vm508_vm1, %v491_v4, 0.0 }
 0x113   : > { %510 = vadd.xlane.f32.xlu0 %v509_v7  ;;  %v494_v8 = vpop.f32.mrb[3].mxu0  ;;  %v518_v9 = vsel %vm508_vm1, %v1707_v6, 0.0  ;;  %v589_v7 = vld [vmem:[%s2486_s6 + $0x8] sm:$0xff] }
 0x114   : > { %v512_v10 = vsel %vm508_vm1, %v494_v8, 0.0 }
 0x116   : > { %519 = vadd.xlane.f32.xlu1 %v518_v9 }
 0x117   : > { %513 = vadd.xlane.f32.xlu0 %v512_v10 }
 0x19f   : > { %v517_v11 = vpop.xlane.xlu1 %516 }
 0x1a0   : > { %v524_v12 = vmul.f32 0.03125, %v517_v11  ;;  %v511_v13 = vpop.xlane.xlu0 %510 }
 0x1a1   : > { %v522_v14 = vmul.f32 0.03125, %v511_v13 }
 0x1a2   : > { %v528_v15 = vsub.f32 %v1706_v3, %v524_v12 }
 0x1a3   : > { %v526_v16 = vsub.f32 %v491_v4, %v522_v14  ;;  %v520_v17 = vpop.xlane.xlu1 %519  ;;  %v591_v4 = vld [vmem:[%s2486_s6 + $0x18] sm:$0xff] }
 0x1a4   : > { %v525_v18 = vmul.f32 0.03125, %v520_v17  ;;  %v514_v19 = vpop.xlane.xlu0 %513  ;;  %v532_v25 = vmul.f32 %v528_v15, %v528_v15 }
 0x1a5   : > { %v523_v20 = vmul.f32 0.03125, %v514_v19  ;;  %v530_v21 = vmul.f32 %v526_v16, %v526_v16 }
 0x1a6   : > { %v529_v22 = vsub.f32 %v1707_v6, %v525_v18  ;;  %v540_v27 = vsel %vm508_vm1, %v532_v25, 0.0  ;;  %v588_v6 = vld [vmem:[%s2486_s6] sm:$0xff] }
 0x1a7   : > { %v527_v23 = vsub.f32 %v494_v8, %v523_v20  ;;  %v534_v24 = vsel %vm508_vm1, %v530_v21, 0.0  ;;  %v1877_v18 = vld [vmem:[%s2481_s1] sm:$0xff]  }
 0x1a8   : > { %535 = vadd.xlane.f32.xlu0 %v534_v24  ;;  %v533_v29 = vmul.f32 %v529_v22, %v529_v22 }
 0x1a9   : > { %v531_v26 = vmul.f32 %v527_v23, %v527_v23 }
 0x1aa   : > { %v543_v30 = vsel %vm508_vm1, %v533_v29, 0.0  ;;  %v1879_v29 = vld [vmem:[%s2481_s1 + $0x10] sm:$0xff]  }
 0x1ab   : > { %v537_v28 = vsel %vm508_vm1, %v531_v26, 0.0 }
 0x1ac   : > { %541 = vadd.xlane.f32.xlu0 %v540_v27  ;;  %538 = vadd.xlane.f32.xlu1 %v537_v28  ;;  %v1878_v27 = vld [vmem:[%s2481_s1 + $0x8] sm:$0xff]  }
 0x1b0   : > { %544 = vadd.xlane.f32.xlu1 %v543_v30 }
 0x235   : > { %v536_v33 = vpop.xlane.xlu0 %535 }
 0x236   : > { %v546_v34 = vmul.f32 0.03125, %v536_v33  ;;  %v1880_v33 = vld [vmem:[%s2481_s1 + $0x18] sm:$0xff]  }
 0x238   : > { %v550_v35 = vadd.f32 1e-06, %v546_v34 }
 0x239   : > { %v539_v36 = vpop.xlane.xlu1 %538  ;;  %v542_v37 = vpop.xlane.xlu0 %541 }
 0x23a   : > { %1883 = vrsqrt.f32 %v550_v35  ;;  %v547_v38 = vmul.f32 0.03125, %v539_v36  ;;  %v548_v39 = vmul.f32 0.03125, %v542_v37 }
 0x23c   : > { %v551_v40 = vadd.f32 1e-06, %v547_v38  ;;  %v552_v41 = vadd.f32 1e-06, %v548_v39 }
 0x23d   : > { %v545_v42 = vpop.xlane.xlu1 %544 }
 0x23e   : > { %1885 = vrsqrt.f32 %v551_v40  ;;  %v549_v43 = vmul.f32 0.03125, %v545_v42 }
 0x23f   : > { %1887 = vrsqrt.f32 %v552_v41 }
 0x240   : > { %v553_v44 = vadd.f32 1e-06, %v549_v43 }
 0x242   : > { %1889 = vrsqrt.f32 %v553_v44 }
 0x244   : > { %v1884_v45 = vpop.eup %1883 }
 0x245   : > { %v558_v46 = vmul.f32 %v1884_v45, %v526_v16 }
 0x247   : > { %v568_v51 = vmul.f32 %v1625_v47, %v558_v46 }
 0x248   : > { %v1886_v48 = vpop.eup %1885 }
 0x249   : > { %v1888_v49 = vpop.eup %1887  ;;  %v559_v50 = vmul.f32 %v1886_v48, %v527_v23  ;;  %v578_v57 = vadd.f32 %v1626_v53, %v568_v51 }
 0x24a   : > { %v560_v52 = vmul.f32 %v1888_v49, %v528_v15 }
 0x24b   : > { %v569_v54 = vmul.f32 %v1625_v47, %v559_v50 }
 0x24c   : > { %v1890_v55 = vpop.eup %1889  ;;  %v570_v59 = vmul.f32 %v1625_v47, %v560_v52 }
 0x24d   : > { %v561_v56 = vmul.f32 %v1890_v55, %v529_v22  ;;  %v579_v58 = vadd.f32 %v1626_v53, %v569_v54 }
 0x24e   : > { %v580_v62 = vadd.f32 %v1626_v53, %v570_v59 }
 0x24f   : > { %v582_v60 = vpack.c.bf16 %v579_v58, %v578_v57  ;;  %v571_v61 = vmul.f32 %v1625_v47, %v561_v56 }
 0x251   : > { %1712 = vmatprep.mubr.msk.bf16.mxu1 %vm508_vm1, %v582_v60  ;;  %v581_v63 = vadd.f32 %v1626_v53, %v571_v61 }
 0x253   : > { %v583_v0 = vpack.c.bf16 %v581_v63, %v580_v62 }
 0x255   : > { %1713 = vmatmul.mubr.msk.bf16.vlgmr.msra.gmra.mrb[0].mxu1 %vm508_vm1, %v583_v0 }
 0x256   : > { %1728 = vmatprep.mubr.msk.bf16.mxu1 %vm2027_vm2, %v2026_v1 }
 0x328   : > { %v1714_v3 = vpop.f32.mrb[0].mxu1 }
 0x329   : > { %v644_v5 = vpop.f32.mrb[1].mxu1  ;;  %v653_v9 = vadd.f32 %v1714_v3, %v590_v2 }
 0x32a   : > { %v1715_v8 = vpop.f32.mrb[2].mxu1  ;;  %v645_v12 = vadd.f32 %v644_v5, %v588_v6 }
 0x32b   : > { %v656_v10 = vadd.f32 %v1715_v8, %v591_v4  ;;  %v647_v11 = vpop.f32.mrb[3].mxu1 }
 0x32c   : > { %v648_v13 = vadd.f32 %v647_v11, %v589_v7 }
 0x32d   : > { %v2228_v14 = vpack.c.bf16 %v656_v10, %v653_v9 }
 0x32e   : > { %v2230_v15 = vpack.c.bf16 %v648_v13, %v645_v12 }
 0x32f   : > { %665 = vrot.lane.b32.xlu1 %v2228_v14, %s2028_s29  ;;  %v696_v17 = vsel %vm688_vm3, %v2228_v14, 0 }
 0x330   : > { %663 = vrot.lane.b32.xlu0 %v2230_v15, %s2028_s29  ;;  %v693_v16 = vsel %vm688_vm3, %v2230_v15, 0  ;;  %s2031_s29 = smov 96  }
 0x331   : > { %1717 = vmatpush3.bf16.xpose.msra.mxu0 %v693_v16 }
 0x332   : > { %1718 = vmatprep.subr.bf16.mxu0 %v2026_v1 }
 0x333   : > { %667 = vrot.lane.b32.xlu1 %v2230_v15, %s2029_s23 }
 0x334   : > { %669 = vrot.lane.b32.xlu0 %v2228_v14, %s2029_s23  ;;  %s1659_s23 = sshll.u32 %s2121_s25, 8 }
 0x335   : > { %s2436_s18 = scalar_lea.hbm %s2492_s12, %s1659_s23 }
 0x337   : > { %671 = vrot.lane.b32.xlu1 %v2230_v15, %s2030_s30 }
 0x339   : > { %1719 = vmatpush3.bf16.xpose.msra.mxu0 %v696_v17 }
 0x33a   : > { %1732 = vmatprep.subr.bf16.mxu0 %v2026_v1 }
 0x33b   : > { %673 = vrot.lane.b32.xlu1 %v2228_v14, %s2030_s30 }
 0x340   : > { %1721 = vmatmul.mubr.msk.bf16.vlgmr.msra.gmra.mrb[4].mxu0 %vm688_vm3, %v1877_v18 }
 0x341   : > { %1736 = vmatprep.mubr.msk.bf16.mxu0 %vm2027_vm2, %v2026_v1 }
 0x3a1   : > { %v2250_v19 = vpop.permute.xlu1 %665 }
 0x3a2   : > { %v2252_v20 = vpop.permute.xlu0 %663  ;;  %v751_v24 = vsel %vm688_vm3, %v2250_v19, 0 }
 0x3a3   : > { %v748_v21 = vsel %vm688_vm3, %v2252_v20, 0 }
 0x3a4   : > { %1725 = vmatpush3.bf16.xpose.msra.mxu1 %v748_v21 }
 0x3a5   : > { %v2256_v22 = vpop.permute.xlu1 %667  ;;  %1726 = vmatprep.subr.bf16.mxu1 %v2026_v1 }
 0x3a6   : > { %v803_v23 = vsel %vm688_vm3, %v2256_v22, 0  ;;  %v2264_v25 = vpop.permute.xlu0 %669 }
 0x3a7   : > { %1733 = vmatpush3.bf16.xpose.msra.mxu0 %v803_v23  ;;  %v806_v26 = vsel %vm688_vm3, %v2264_v25, 0 }
 0x3a8   : > { %1734 = vmatprep.subr.bf16.mxu0 %v2026_v1 }
 0x3a9   : > { %v672_v28 = vpop.permute.xlu1 %671 }
 0x3aa   : > { %v858_v30 = vsel %vm688_vm3, %v672_v28, 0 }
 0x3ac   : > { %1727 = vmatpush3.bf16.xpose.msra.mxu1 %v751_v24 }
 0x3ad   : > { %1740 = vmatprep.subr.bf16.mxu1 %v2026_v1  ;;  %v2284_v31 = vpop.permute.xlu1 %673 }
 0x3ae   : > { %v861_v32 = vsel %vm688_vm3, %v2284_v31, 0 }
 0x3af   : > { %1735 = vmatpush3.bf16.xpose.msra.mxu0 %v806_v26 }
 0x3b0   : > { %1748 = vmatprep.subr.bf16.mxu0 %v2026_v1 }
 0x3b3   : > { %1729 = vmatmul.mubr.msk.bf16.vlgmr.msra.gmra.mrb[4].mxu1 %vm688_vm3, %v1878_v27 }
 0x3b4   : > { %1741 = vmatpush3.bf16.xpose.msra.mxu1 %v858_v30  ;;  %1744 = vmatprep.mubr.msk.bf16.mxu1 %vm2027_vm2, %v2026_v1 }
 0x3b5   : > { %1742 = vmatprep.subr.bf16.mxu1 %v2026_v1 }
 0x3b6   : > { %1737 = vmatmul.mubr.msk.bf16.vlgmr.msra.gmra.mrb[8].mxu0 %vm688_vm3, %v1879_v29 }
 0x3b7   : > { %1752 = vmatprep.mubr.msk.bf16.mxu0 %vm2027_vm2, %v2026_v1 }
 0x3bc   : > { %1743 = vmatpush3.bf16.xpose.msra.mxu1 %v861_v32 }
 0x3bd   : > { %1756 = vmatprep.subr.bf16.mxu1 %v2026_v1 }
 0x3c3   : > { %1745 = vmatmul.mubr.msk.bf16.vlgmr.msra.gmra.mrb[8].mxu1 %vm688_vm3, %v1880_v33 }
 0x3c4   : > { %1760 = vmatprep.mubr.msk.bf16.mxu1 %vm2027_vm2, %v2026_v1 }
 0x413   : > { %v732_v34 = vpop.f32.mrb[4].mxu0 }
 0x414   : > { %v1722_v35 = vpop.f32.mrb[5].mxu0  ;;  %v904_v36 = vsel %vm508_vm1, %v732_v34, -inf }
 0x415   : > { %905 = vmax.xlane.f32.xlu0 %v904_v36  ;;  %v735_v37 = vpop.f32.mrb[6].mxu0 }
 0x416   : > { %v907_v38 = vsel %vm508_vm1, %v735_v37, -inf  ;;  %v1723_v39 = vpop.f32.mrb[7].mxu0 }
 0x417   : > { %908 = vmax.xlane.f32.xlu1 %v907_v38 }
 0x486   : > { %v787_v40 = vpop.f32.mrb[4].mxu1 }
 0x487   : > { %v1730_v41 = vpop.f32.mrb[5].mxu1  ;;  %v910_v42 = vsel %vm508_vm1, %v787_v40, -inf }
 0x488   : > { %v790_v43 = vpop.f32.mrb[6].mxu1  ;;  %911 = vmax.xlane.f32.xlu0 %v910_v42 }
 0x489   : > { %v1731_v44 = vpop.f32.mrb[7].mxu1  ;;  %v842_v45 = vpop.f32.mrb[8].mxu0  ;;  %v913_v48 = vsel %vm508_vm1, %v790_v43, -inf }
 0x48a   : > { %v1738_v46 = vpop.f32.mrb[9].mxu0  ;;  %v916_v51 = vsel %vm508_vm1, %v842_v45, -inf }
 0x48b   : > { %v845_v47 = vpop.f32.mrb[10].mxu0 }
 0x48c   : > { %914 = vmax.xlane.f32.xlu0 %v913_v48  ;;  %v919_v49 = vsel %vm508_vm1, %v845_v47, -inf  ;;  %v1739_v50 = vpop.f32.mrb[11].mxu0 }
 0x48d   : > { %920 = vmax.xlane.f32.xlu1 %v919_v49 }
 0x490   : > { %917 = vmax.xlane.f32.xlu0 %v916_v51 }
 0x496   : > { %v897_v52 = vpop.f32.mrb[8].mxu1 }
 0x497   : > { %v1746_v53 = vpop.f32.mrb[9].mxu1  ;;  %v922_v54 = vsel %vm508_vm1, %v897_v52, -inf }
 0x498   : > { %v900_v55 = vpop.f32.mrb[10].mxu1  ;;  %923 = vmax.xlane.f32.xlu0 %v922_v54 }
 0x499   : > { %v1747_v56 = vpop.f32.mrb[11].mxu1  ;;  %v925_v57 = vsel %vm508_vm1, %v900_v55, -inf }
 0x49a   : > { %926 = vmax.xlane.f32.xlu1 %v925_v57 }
 0x4a2   : > { %v906_v58 = vpop.xlane.xlu0 %905 }
 0x4a3   : > { %v928_v59 = vsub.f32 %v732_v34, %v906_v58 }
 0x4a4   : > { %v909_v61 = vpop.xlane.xlu1 %908 }
 0x4a5   : > { %v936_v60 = vmul.f32 1.442695, %v928_v59  ;;  %v929_v62 = vsub.f32 %v735_v37, %v909_v61 }
 0x4a7   : > { %1891 = vpow2.f32 %v936_v60  ;;  %v938_v63 = vmul.f32 1.442695, %v929_v62 }
 0x4a9   : > { %1893 = vpow2.f32 %v938_v63 }
 0x4ab   : > { %1046 = vrot.lane.b32.xlu1 %v2252_v20, %s2031_s29 }
 0x4ae   : > { %996 = vrot.lane.b32.xlu0 %v2230_v15, %s2031_s29 }
 0x4af   : > { %998 = vrot.lane.b32.xlu1 %v2228_v14, %s2031_s29 }
 0x4b1   : > { %v2314_v0 = vpop.eup %1891 }
 0x4b2   : > { %1096 = vrot.lane.b32.xlu0 %v2256_v22, %s2031_s29  ;;  %v952_v2 = vsel %vm508_vm1, %v2314_v0, 0.0 }
 0x4b3   : > { %1048 = vrot.lane.b32.xlu1 %v2250_v19, %s2031_s29  ;;  %v2318_v3 = vpop.eup %1893 }
 0x4b4   : > { %v955_v4 = vsel %vm508_vm1, %v2318_v3, 0.0 }
 0x4b7   : > { %1146 = vrot.lane.b32.xlu1 %v672_v28, %s2031_s29 }
 0x4d1   : > { %953 = vadd.xlane.f32.xlu0 %v952_v2 }
 0x4db   : > { %956 = vadd.xlane.f32.xlu1 %v955_v4 }
 0x515   : > { %v912_v5 = vpop.xlane.xlu0 %911 }
 0x516   : > { %v930_v6 = vsub.f32 %v787_v40, %v912_v5 }
 0x518   : > { %v940_v7 = vmul.f32 1.442695, %v930_v6 }
 0x519   : > { %v915_v8 = vpop.xlane.xlu0 %914 }
 0x51a   : > { %1895 = vpow2.f32 %v940_v7  ;;  %v931_v9 = vsub.f32 %v790_v43, %v915_v8  ;;  %v921_v10 = vpop.xlane.xlu1 %920 }
 0x51b   : > { %v933_v11 = vsub.f32 %v845_v47, %v921_v10  ;;  %v1201_v10 = vld [vmem:[%s2487_s7 + $0x4] sm:$0xf] }
 0x51c   : > { %v942_v12 = vmul.f32 1.442695, %v931_v9 }
 0x51d   : > { %v946_v13 = vmul.f32 1.442695, %v933_v11  ;;  %v918_v14 = vpop.xlane.xlu0 %917  ;;  %v1256_v11 = vsel %vm1207_vm4, %v1201_v10, 0 }
 0x51e   : > { %1897 = vpow2.f32 %v942_v12  ;;  %v932_v15 = vsub.f32 %v842_v45, %v918_v14 }
 0x51f   : > { %1899 = vpow2.f32 %v946_v13  ;;  %v1202_v13 = vld [vmem:[%s2487_s7 + $0x8] sm:$0xf] }
 0x520   : > { %v944_v16 = vmul.f32 1.442695, %v932_v15 }
 0x522   : > { %1901 = vpow2.f32 %v944_v16 }
 0x524   : > { %v2322_v17 = vpop.eup %1895 }
 0x525   : > { %v924_v18 = vpop.xlane.xlu0 %923  ;;  %v958_v19 = vsel %vm508_vm1, %v2322_v17, 0.0 }
 0x526   : > { %v934_v20 = vsub.f32 %v897_v52, %v924_v18  ;;  %959 = vadd.xlane.f32.xlu0 %v958_v19  ;;  %v1303_v18 = vsel %vm1207_vm4, %v1202_v13, 0 }
 0x527   : > { %v927_v21 = vpop.xlane.xlu1 %926 }
 0x528   : > { %v1898_v22 = vpop.eup %1897  ;;  %v948_v23 = vmul.f32 1.442695, %v934_v20  ;;  %v935_v24 = vsub.f32 %v900_v55, %v927_v21  ;;  %v1203_v20 = vld [vmem:[%s2487_s7 + $0xc] sm:$0xf] }
 0x529   : > { %v997_v26 = vpop.permute.xlu0 %996  ;;  %v961_v27 = vsel %vm508_vm1, %v1898_v22, 0.0  ;;  %v2327_v28 = vpop.eup %1899 }
 0x52a   : > { %1903 = vpow2.f32 %v948_v23  ;;  %v950_v29 = vmul.f32 1.442695, %v935_v24  ;;  %1749 = vmatpush3.bf16.msra.mxu0 %v997_v26  ;;  %962 = vadd.xlane.f32.xlu1 %v961_v27  ;;  %v967_v34 = vsel %vm508_vm1, %v2327_v28, 0.0  ;;  %v1350_v26 = vsel %vm1207_vm4, %v1203_v20, 0 }
 0x52b   : > { %v1047_v30 = vpop.permute.xlu1 %1046  ;;  %1750 = vmatprep.subr.bf16.mxu0 %v2026_v1 }
 0x52c   : > { %v1902_v32 = vpop.eup %1901  ;;  %1905 = vpow2.f32 %v950_v29  ;;  %1757 = vmatpush3.bf16.msra.mxu1 %v1047_v30 }
 0x52d   : > { %v964_v33 = vsel %vm508_vm1, %v1902_v32, 0.0  ;;  %1758 = vmatprep.subr.bf16.mxu1 %v2026_v1  ;;  %v1097_v41 = vpop.permute.xlu0 %1096 }
 0x52e   : > { %965 = vadd.xlane.f32.xlu0 %v964_v33  ;;  %968 = vadd.xlane.f32.xlu1 %v967_v34 }
 0x52f   : > { %v999_v35 = vpop.permute.xlu1 %998 }
 0x530   : > { %1751 = vmatpush3.bf16.msra.mxu0 %v999_v35 }
 0x531   : > { %1764 = vmatprep.subr.bf16.mxu0 %v2026_v1 }
 0x533   : > { %v1049_v36 = vpop.permute.xlu1 %1048 }
 0x534   : > { %v2335_v37 = vpop.eup %1903  ;;  %1759 = vmatpush3.bf16.msra.mxu1 %v1049_v36 }
 0x535   : > { %v970_v38 = vsel %vm508_vm1, %v2335_v37, 0.0  ;;  %1772 = vmatprep.subr.bf16.mxu1 %v2026_v1 }
 0x536   : > { %v2340_v39 = vpop.eup %1905  ;;  %971 = vadd.xlane.f32.xlu0 %v970_v38 }
 0x537   : > { %v973_v40 = vsel %vm508_vm1, %v2340_v39, 0.0  ;;  %v1147_v42 = vpop.permute.xlu1 %1146 }
 0x538   : > { %974 = vadd.xlane.f32.xlu1 %v973_v40 }
 0x549   : > { %1148 = vrot.lane.b32.xlu1 %v2284_v31, %s2031_s29 }
 0x54c   : > { %1098 = vrot.lane.b32.xlu0 %v2264_v25, %s2031_s29  ;;  %s1537_s29 = sshll.u32 %s421_s28, 4  ;;  %s2430_s29 = int_to_ptr.vmem [resolvable:$true] %s1537_s29 }
 0x54d   : > { %s1955_s25 = scalar_lea.vmem %s2430_s29, 256  ;;  %p1962_p2 = scmp.lt.s32.totalorder %s2430_s29, %s1960_s17 }
 0x54e   : > { %p1956_p6 = scmp.ne.s32.totalorder %s2430_s29, %s1955_s25  ;;  %p1963_p3 = scmp.lt.s32.totalorder %s1961_s20, %s1955_s25 }
 0x550   : > { %p1957_p10 = pnand %p1956_p6, %p2506_p9  ;;  %p1964_p4 = por %p1963_p3, %p1962_p2 }
 0x552   : > { %p1958_p12 = pneg %p1957_p10 }
 0x554   : > { %p1965_p7 = pnand %p1964_p4, %p1958_p12 }
 0x55e   : > { %v954_v43 = vpop.xlane.xlu0 %953 }
 0x55f   : > { %1907 = vrcp.f32 %v954_v43 }
 0x568   : > { %v957_v44 = vpop.xlane.xlu1 %956 }
 0x569   : > { %1909 = vrcp.f32 %v957_v44  ;;  %v1908_v45 = vpop.eup %1907 }
 0x56a   : > { %v984_v47 = vmul.f32 %v1908_v45, %v2314_v0 }
 0x573   : > { %v1910_v46 = vpop.eup %1909 }
 0x574   : > { %v985_v48 = vmul.f32 %v1910_v46, %v2318_v3  ;;  %v1200_v3 = vld [vmem:[%s2487_s7] sm:$0xf] }
 0x575   : > { %v1209_v4 = vsel %vm1207_vm4, %v1200_v3, 0 }
 0x576   : > { %v992_v49 = vpack.c.bf16 %v985_v48, %v984_v47 }
 0x578   : > { %1753 = vmatmul.mubr.msk.bf16.vlgmr.msra.gmra.mrb[12].mxu0 %vm508_vm1, %v992_v49 }
 0x579   : > { %1765 = vmatpush3.bf16.msra.mxu0 %v1097_v41  ;;  %1768 = vmatprep.mubr.msk.bf16.mxu0 %vm2027_vm2, %v2026_v1 }
 0x57a   : > { %1766 = vmatprep.subr.bf16.mxu0 %v2026_v1 }
 0x5b3   : > { %v960_v25 = vpop.xlane.xlu0 %959 }
 0x5b4   : > { %1911 = vrcp.f32 %v960_v25 }
 0x5b7   : > { %v963_v31 = vpop.xlane.xlu1 %962 }
 0x5b8   : > { %1913 = vrcp.f32 %v963_v31 }
 0x5bb   : > { %v966_v50 = vpop.xlane.xlu0 %965  ;;  %v969_v51 = vpop.xlane.xlu1 %968 }
 0x5bc   : > { %1915 = vrcp.f32 %v966_v50 }
 0x5bd   : > { %1917 = vrcp.f32 %v969_v51 }
 0x5be   : > { %v1912_v52 = vpop.eup %1911 }
 0x5bf   : > { %v986_v54 = vmul.f32 %v1912_v52, %v2322_v17 }
 0x5c2   : > { %v1914_v53 = vpop.eup %1913 }
 0x5c3   : > { %v987_v55 = vmul.f32 %v1914_v53, %v1898_v22  ;;  %v972_v56 = vpop.xlane.xlu0 %971 }
 0x5c4   : > { %1919 = vrcp.f32 %v972_v56 }
 0x5c5   : > { %v975_v57 = vpop.xlane.xlu1 %974  ;;  %v993_v58 = vpack.c.bf16 %v987_v55, %v986_v54 }
 0x5c6   : > { %v1916_v59 = vpop.eup %1915  ;;  %1921 = vrcp.f32 %v975_v57 }
 0x5c7   : > { %v1918_v60 = vpop.eup %1917  ;;  %v988_v61 = vmul.f32 %v1916_v59, %v1902_v32  ;;  %v1099_v62 = vpop.permute.xlu0 %1098  ;;  %1761 = vmatmul.mubr.msk.bf16.vlgmr.msra.gmra.mrb[12].mxu1 %vm508_vm1, %v993_v58 }
 0x5c8   : > { %v989_v63 = vmul.f32 %v1918_v60, %v2327_v28  ;;  %1773 = vmatpush3.bf16.msra.mxu1 %v1147_v42  ;;  %1767 = vmatpush3.bf16.msra.mxu0 %v1099_v62 }
 0x5c9   : > { %v1149_v0 = vpop.permute.xlu1 %1148  ;;  %1774 = vmatprep.subr.bf16.mxu1 %v2026_v1  ;;  %1776 = vmatprep.mubr.msk.bf16.mxu1 %vm2027_vm2, %v2026_v1 }
 0x5ca   : > { %v994_v2 = vpack.c.bf16 %v989_v63, %v988_v61  ;;  %1780 = vmatprep.subr.bf16.mxu0 %v2026_v1  ;;  %v1647_v61 = vld [vmem:[%s2488_s8] ss:$0 sm:$0xff] }
 0x5cc   : > { %1769 = vmatmul.mubr.msk.bf16.vlgmr.msra.gmra.mrb[16].mxu0 %vm508_vm1, %v994_v2  ;;  %1775 = vmatpush3.bf16.msra.mxu1 %v1149_v0 }
 0x5cd   : > { %1782 = vmatprep.mubr.msk.bf16.mxu0 %vm2027_vm2, %v2026_v1  ;;  %1786 = vmatprep.subr.bf16.mxu1 %v2026_v1 }
 0x5ce   : > { %v1920_v5 = vpop.eup %1919  ;;  %1781 = vmatpush3.bf16.msra.mxu0 %v1209_v4 }
 0x5cf   : > { %1792 = vmatprep.subr.bf16.mxu0 %v2026_v1  ;;  %v990_v7 = vmul.f32 %v1920_v5, %v2335_v37 }
 0x5d0   : > { %v1922_v6 = vpop.eup %1921 }
 0x5d1   : > { %v991_v8 = vmul.f32 %v1922_v6, %v2340_v39 }
 0x5d3   : > { %v995_v9 = vpack.c.bf16 %v991_v8, %v990_v7 }
 0x5d5   : > { %1777 = vmatmul.mubr.msk.bf16.vlgmr.msra.gmra.mrb[16].mxu1 %vm508_vm1, %v995_v9 }
 0x5d6   : > { %1788 = vmatprep.mubr.msk.bf16.mxu1 %vm2027_vm2, %v2026_v1  ;;  %1787 = vmatpush3.bf16.msra.mxu1 %v1256_v11 }
 0x5d7   : > { %1798 = vmatprep.subr.bf16.mxu1 %v2026_v1 }
 0x64b   : > { %v1039_v12 = vpop.f32.mrb[12].mxu0 }
 0x64c   : > { %v1754_v14 = vpop.f32.mrb[13].mxu0 }
 0x64d   : > { %v1042_v15 = vpop.f32.mrb[14].mxu0 }
 0x64e   : > { %v1196_v16 = vpack.c.bf16 %v1042_v15, %v1039_v12  ;;  %v1755_v17 = vpop.f32.mrb[15].mxu0 }
 0x650   : > { %1783 = vmatmul.mubr.msk.bf16.vlgmr.msra.gmra.mrb[20].mxu0 %vm688_vm3, %v1196_v16 }
 0x651   : > { %1793 = vmatpush3.bf16.msra.mxu0 %v1303_v18  ;;  %1794 = vmatprep.mubr.msk.bf16.mxu0 %vm2027_vm2, %v2026_v1  ;;  %v1881_v18 = vld [vmem:[%s2491_s11] sm:$0xff]  }
 0x652   : > { %1804 = vmatprep.subr.bf16.mxu0 %v2026_v1 }
 0x69a   : > { %v1089_v19 = vpop.f32.mrb[12].mxu1 }
 0x69b   : > { %v1762_v21 = vpop.f32.mrb[13].mxu1 }
 0x69c   : > { %v1092_v22 = vpop.f32.mrb[14].mxu1 }
 0x69d   : > { %v1197_v23 = vpack.c.bf16 %v1092_v22, %v1089_v19  ;;  %v1763_v24 = vpop.f32.mrb[15].mxu1  ;;  %v1882_v19 = vld [vmem:[%s2491_s11 + $0x8] sm:$0xff]  }
 0x69f   : > { %v1139_v27 = vpop.f32.mrb[16].mxu0  ;;  %1789 = vmatmul.mubr.msk.bf16.vlgmr.msra.gmra.mrb[20].mxu1 %vm688_vm3, %v1197_v23 }
 0x6a0   : > { %v1770_v28 = vpop.f32.mrb[17].mxu0  ;;  %1799 = vmatpush3.bf16.msra.mxu1 %v1350_v26  ;;  %1800 = vmatprep.mubr.msk.bf16.mxu1 %vm2027_vm2, %v2026_v1 }
 0x6a1   : > { %v1142_v29 = vpop.f32.mrb[18].mxu0 }
 0x6a2   : > { %v1198_v30 = vpack.c.bf16 %v1142_v29, %v1139_v27  ;;  %v1771_v32 = vpop.f32.mrb[19].mxu0  ;;  %v1648_v29 = vld [vmem:[%s2489_s9] ss:$0 sm:$0xff] }
 0x6a4   : > { %1795 = vmatmul.mubr.msk.bf16.vlgmr.msra.gmra.mrb[24].mxu0 %vm688_vm3, %v1198_v30 }
 0x6a5   : > { %1808 = vmatprep.mubr.msk.bf16.mxu0 %vm2027_vm2, %v2026_v1  ;;  %1805 = vmatpush3.bf16.msra.mxu0 %v1881_v18 }
 0x6a6   : > { %1806 = vmatprep.subr.bf16.mxu0 %v2026_v1 }
 0x6a8   : > { %v1189_v33 = vpop.f32.mrb[16].mxu1 }
 0x6a9   : > { %v1778_v34 = vpop.f32.mrb[17].mxu1  ;;  %1807 = vmatpush3.bf16.msra.mxu0 %v1882_v19 }
 0x6aa   : > { %v1192_v35 = vpop.f32.mrb[18].mxu1 }
 0x6ab   : > { %v1199_v36 = vpack.c.bf16 %v1192_v35, %v1189_v33  ;;  %v1779_v37 = vpop.f32.mrb[19].mxu1  ;;  %v1649_v33 = vld [vmem:[%s2490_s10] ss:$0 sm:$0xff] }
 0x6ad   : > { %1801 = vmatmul.mubr.msk.bf16.vlgmr.msra.gmra.mrb[24].mxu1 %vm688_vm3, %v1199_v36 }
 0x723   : > { %v1245_v38 = vpop.f32.mrb[20].mxu0 }
 0x724   : > { %v1784_v39 = vpop.f32.mrb[21].mxu0  ;;  %v1393_v43 = vsel %vm508_vm1, %v1245_v38, 0.0 }
 0x725   : > { %v1248_v40 = vpop.f32.mrb[22].mxu0 }
 0x726   : > { %v1785_v41 = vpop.f32.mrb[23].mxu0  ;;  %v1400_v48 = vsel %vm508_vm1, %v1248_v40, 0.0 }
 0x772   : > { %v1292_v42 = vpop.f32.mrb[20].mxu1 }
 0x773   : > { %v1394_v44 = vsel %vm508_vm1, %v1292_v42, 0.0  ;;  %v1790_v45 = vpop.f32.mrb[21].mxu1 }
 0x774   : > { %v1395_v46 = vadd.f32 %v1394_v44, %v1393_v43  ;;  %v1295_v47 = vpop.f32.mrb[22].mxu1 }
 0x775   : > { %v1401_v49 = vsel %vm508_vm1, %v1295_v47, 0.0  ;;  %v1791_v25 = vpop.f32.mrb[23].mxu1 }
 0x776   : > { %v1402_v31 = vadd.f32 %v1401_v49, %v1400_v48 }
 0x777   : > { %v1339_v50 = vpop.f32.mrb[24].mxu0 }
 0x778   : > { %v1396_v51 = vsel %vm508_vm1, %v1339_v50, 0.0  ;;  %v1796_v52 = vpop.f32.mrb[25].mxu0 }
 0x779   : > { %v1397_v53 = vadd.f32 %v1396_v51, %v1395_v46  ;;  %v1342_v54 = vpop.f32.mrb[26].mxu0 }
 0x77a   : > { %v1403_v55 = vsel %vm508_vm1, %v1342_v54, 0.0  ;;  %v1797_v56 = vpop.f32.mrb[27].mxu0 }
 0x77b   : > { %v1404_v57 = vadd.f32 %v1403_v55, %v1402_v31 }
 0x780   : > { %v1386_v58 = vpop.f32.mrb[24].mxu1 }
 0x781   : > { %v1398_v59 = vsel %vm508_vm1, %v1386_v58, 0.0  ;;  %v1802_v60 = vpop.f32.mrb[25].mxu1 }
 0x782   : > { %v1399_v62 = vadd.f32 %v1398_v59, %v1397_v53  ;;  %v1389_v63 = vpop.f32.mrb[26].mxu1 }
 0x783   : > { %v1405_v0 = vsel %vm508_vm1, %v1389_v63, 0.0  ;;  %v1803_v2 = vpop.f32.mrb[27].mxu1 }
 0x784   : > { %v1406_v3 = vadd.f32 %v1405_v0, %v1404_v57  ;;  %v1414_v4 = vadd.f32 %v1647_v61, %v1399_v62 }
 0x786   : > { %v1418_v5 = vsel %vm508_vm1, %v1414_v4, 0.0  ;;  %v1415_v6 = vadd.f32 %v1647_v61, %v1406_v3 }
 0x787   : > { %1419 = vadd.xlane.f32.xlu0 %v1418_v5 }
 0x788   : > { %v1421_v7 = vsel %vm508_vm1, %v1415_v6, 0.0 }
 0x789   : > { %1422 = vadd.xlane.f32.xlu1 %v1421_v7 }
 0x814   : > { %v1420_v8 = vpop.xlane.xlu0 %1419 }
 0x815   : > { %v1424_v9 = vmul.f32 0.03125, %v1420_v8 }
 0x816   : > { %v1423_v10 = vpop.xlane.xlu1 %1422 }
 0x817   : > { %v1426_v11 = vsub.f32 %v1414_v4, %v1424_v9  ;;  %v1425_v12 = vmul.f32 0.03125, %v1423_v10 }
 0x819   : > { %v1427_v13 = vsub.f32 %v1415_v6, %v1425_v12  ;;  %v1428_v14 = vmul.f32 %v1426_v11, %v1426_v11 }
 0x81b   : > { %v1430_v15 = vsel %vm508_vm1, %v1428_v14, 0.0  ;;  %v1429_v16 = vmul.f32 %v1427_v13, %v1427_v13 }
 0x81c   : > { %1431 = vadd.xlane.f32.xlu0 %v1430_v15 }
 0x81d   : > { %v1433_v17 = vsel %vm508_vm1, %v1429_v16, 0.0 }
 0x820   : > { %1434 = vadd.xlane.f32.xlu0 %v1433_v17 }
 0x8a9   : > { %v1432_v20 = vpop.xlane.xlu0 %1431 }
 0x8aa   : > { %v1436_v21 = vmul.f32 0.03125, %v1432_v20 }
 0x8ac   : > { %v1438_v22 = vadd.f32 1e-06, %v1436_v21 }
 0x8ad   : > { %v1435_v23 = vpop.xlane.xlu0 %1434 }
 0x8ae   : > { %1923 = vrsqrt.f32 %v1438_v22  ;;  %v1437_v24 = vmul.f32 0.03125, %v1435_v23 }
 0x8b0   : > { %v1439_v26 = vadd.f32 1e-06, %v1437_v24 }
 0x8b2   : > { %1925 = vrsqrt.f32 %v1439_v26 }
 0x8b8   : > { %v1924_v27 = vpop.eup %1923 }
 0x8b9   : > { %v1442_v28 = vmul.f32 %v1924_v27, %v1426_v11 }
 0x8bb   : > { %v1450_v32 = vmul.f32 %v1648_v29, %v1442_v28 }
 0x8bc   : > { %v1926_v30 = vpop.eup %1925 }
 0x8bd   : > { %v1443_v1 = vmul.f32 %v1926_v30, %v1427_v13  ;;  %v1458_v35 = vadd.f32 %v1649_v33, %v1450_v32 }
 0x8bf   : > { %v1451_v34 = vmul.f32 %v1648_v29, %v1443_v1 }
 0x8c1   : > { %v1459_v36 = vadd.f32 %v1649_v33, %v1451_v34 }
 0x8c3   : > { %v1460_v37 = vpack.c.bf16 %v1459_v36, %v1458_v35 }
 0x8c5   : > { %1809 = vmatmul.mubr.msk.bf16.vlgmr.msra.gmra.mrb[28].mxu0 %vm508_vm1, %v1460_v37 }
 0x998   : > { %v1514_v38 = vpop.f32.mrb[28].mxu0 }
 0x999   : > { %1521 = vst.msk [vmem:[%s421_s28] sm:$0xff] %vm508_vm1, %v1514_v38  ;;  %v1810_v39 = vpop.f32.mrb[29].mxu0 }
 0x99a   : > { %v1517_v40 = vpop.f32.mrb[30].mxu0 }
 0x99b   : > { %1522 = vst.msk [vmem:[%s421_s28 + $0x8] sm:$0xff] %vm508_vm1, %v1517_v40  ;;  %v1811_v41 = vpop.f32.mrb[31].mxu0 }
 0x99c   : > { %1968 = shalt.err (!%p1965_p7)
}
 0x99d   : > { %s1969_s19 = scalar_lea.hbm %s2436_s18, 256  ;;  %s1973_s30 = scalar_lea.hbm %s2492_s12, 512 }
 0x99e   : > { %p1970_p8 = scmp.ne.s32.totalorder %s2436_s18, %s1969_s19  ;;  %p1974_p1 = scmp.lt.u32.totalorder %s2436_s18, %s2492_s12 }
 0x99f   : > { %p1975_p0 = scmp.lt.u32.totalorder %s1973_s30, %s1969_s19  ;;  %p1977_p6 = scmp.lt.u32.totalorder %s1969_s19, %s2436_s18 }
 0x9a0   : > { %p1971_p11 = pnand %p1970_p8, %p2506_p9 }
 0x9a1   : > { %p1976_p5 = por %p1975_p0, %p1974_p1 }
 0x9a2   : > { %p1972_p13 = pneg %p1971_p11 }
 0x9a3   : > { %p1978_p10 = por %p1977_p6, %p1976_p5 }
 0x9a5   : > { %p1979_p12 = pnand %p1978_p10, %p1972_p13 }
 0x9a7   : > { %1982 = shalt.err (!%p1979_p12)
}
 0x9a8   : > { %s2033_s25 = smov 128   ;;  %s2034_s17 = smov 8  }
 0x9a9   : > { %1816 = dma.vmem_to_hbm [thread:$0]  (%p2506_p9), %s2430_s29, 256, %s2436_s18, %s2439_s16, %s2033_s25, %s2033_s25, %s2034_s17  }
 0x9aa PF: > { %p1828_p2 = scmp.ge.s32.totalorder %s2021_s24, 2  ;;  %s1552_s20 = sand.u32 1, %s2009_s21  }
 0x9ab   : > { %p2507_p3 = scmp.ne.s32.totalorder %s2500_s14, 0  ;;  %s1553_s19 = scalar_lea.sflag [#allocation4], %s1552_s20 }
 0x9ad   : > { %p1823_p4 = pnand %p1828_p2, %p2507_p3 }
 0x9af   : > { %2004 = dma.done.wait (!%p1823_p4), %s1553_s19, 256  }
 0x9b0   : > { %2006 = vsyncadd (!%p1823_p4), %s1553_s19, 4294967040  ;;  %s2508_s28 = sld [smem:[#allocation8_spill]]  ;;  %s2509_s23 = sld [smem:[#allocation9_spill]] }
 0x9b1   : > { %p23_p7 = scmp.ge.s32.totalorder %s2125_s27, 4   ;;  %s2510_s21 = smov %s2013_s22 }
 0x9b2   : > { %s2512_s24 = smov %s2125_s27 }
 0x9b3   :  { %25 = sbr.rel (!%p23_p7) target bundleno = 4 (0x4), region = 108 }
 0x9b6   : > { %s2511_s22 = smov %s2508_s28 }
 0x9ba   :  { %1558 = vsyncpa [#allocation3], 1 }
 0x9bb   :  { %1560 = vsyncpa [#allocation3 + $0x1], 1 }
 0x9bc   :  { %1561 = vsyncpa [#allocation4], 1 }
 0x9bd   :  { %1563 = vsyncpa [#allocation4 + $0x1], 1 }

</bundles_post_ra>
